<compile_context>
chip_gen: v7x
topology: tpu7x:2x2x1
jax: 0.10.0
libtpu: 0.0.40
codegen_flags: <defaults>
</compile_context>

<pallas_src>
from functools import partial

import jax
import jax.numpy as jnp
from jax import lax
from jax.experimental import pallas as pl
from jax.experimental.pallas import tpu as pltpu

NEG_SLOPE = 0.01  # f.leaky_relu default


def _leaky_relu(x):
    # max(x, 0.01*x) == leaky_relu(x) for slope < 1; mul+max = 2 VALU ops.
    return jnp.maximum(x, NEG_SLOPE * x)


def combiner_kernel(x_ref, w1_ref, b1_ref, w2_ref, b2_ref, w3_ref, b3_ref, o_ref):
    """Fused 3-layer MLP on one (block_b, D) batch tile (feature-major compute)."""
    xb = x_ref[...].astype(jnp.bfloat16)                               # (block_b, D)

    # fc1 + leaky_relu: contract D on both operands so the result lands
    # feature-major as (H1, block_b) with no explicit transpose.  bf16 MXU
    # operands, f32 accumulation.
    h1 = lax.dot_general(
        w1_ref[...], xb,
        dimension_numbers=(((1,), (1,)), ((), ())),
        preferred_element_type=jnp.float32) + b1_ref[...]              # (H1, block_b)
    # Activate + downcast in one expression so only the bf16 copy materialises.
    h1 = _leaky_relu(h1).astype(jnp.bfloat16)

    # fc2 + leaky_relu
    h2 = jnp.dot(w2_ref[...], h1,
                 preferred_element_type=jnp.float32) + b2_ref[...]     # (H2, block_b)
    h2 = _leaky_relu(h2)

    # fc3 (single output unit): VPU multiply + sublane reduce -> lane-dense
    # (1, block_b) row; keeps the MXU free of a width-1 matmul.
    y = jnp.sum(h2 * w3_ref[...], axis=0, keepdims=True) + b3_ref[0, 0]
    o_ref[...] = _leaky_relu(y).astype(o_ref.dtype)                    # (1, block_b)


@partial(jax.jit, static_argnames=("block_b",))
def _combiner_forward_pallas(x, params, block_b):
    """Pallas path. x: (B, D) float32. Returns (B, 1) float32."""
    x = x.astype(jnp.float32)
    B, D = x.shape
    H1 = params["w1"].shape[0]
    H2 = params["w2"].shape[0]
    grid_b = pl.cdiv(B, block_b)

    w1 = params["w1"].astype(jnp.bfloat16)                             # (H1, D)
    w2 = params["w2"].astype(jnp.bfloat16)                             # (H2, H1)
    b1 = params["b1"].astype(jnp.float32)                              # (H1, 1)
    b2 = params["b2"].astype(jnp.float32)                              # (H2, 1)
    w3 = params["w3"].astype(jnp.float32)                              # (H2, 1)
    b3 = params["b3"].astype(jnp.float32)                              # (1, 1) -> SMEM

    full = lambda r, c: pl.BlockSpec((r, c), lambda i: (0, 0))         # weight resident

    cost = pl.CostEstimate(
        flops=2 * B * (D * H1 + H1 * H2 + H2),
        transcendentals=0,
        bytes_accessed=(B * D * 4) + (B * 4)
        + (w1.size + w2.size) * 2
        + (b1.size + b2.size + w3.size + b3.size) * 4,
    )

    # VMEM budget: resident bytes ~= 16*D*block_b (double-buffered f32 x tile
    # + f32 h1 at H1=2D) + a few KiB of weights.  At block_b<=4096, D=32 that
    # is ~2 MiB -- far under v7x's 32 MiB scoped default (64 MiB physical) and
    # v5e/v6e's 128 MiB.  For very large input_size, cap block_b accordingly
    # or raise vmem_limit_bytes via CompilerParams.
    out = pl.pallas_call(
        combiner_kernel,
        out_shape=jax.ShapeDtypeStruct((1, B), jnp.float32),
        grid=(grid_b,),
        in_specs=[
            # x batch tile, f32, read once from HBM.  If the grid ever has to
            # stay fine-grained (small B), add pipeline_mode=pl.Buffered(3)
            # here instead of shrinking the tile.
            pl.BlockSpec((block_b, D), lambda i: (i, 0)),
            full(H1, D), full(H1, 1),                                   # w1, b1
            full(H2, H1), full(H2, 1),                                  # w2, b2
            full(H2, 1),                                                # w3
            pl.BlockSpec(memory_space=pltpu.MemorySpace.SMEM),          # b3 scalar
        ],
        out_specs=pl.BlockSpec((1, block_b), lambda i: (0, i)),         # lane-dense row
        compiler_params=pltpu.CompilerParams(
            dimension_semantics=("parallel",),                          # megacore sharding
        ),
        cost_estimate=cost,
    )(x, w1, b1, w2, b2, w3, b3)

    return out.reshape(B, 1)


def _pick_block_b(B, block_b_max=4096):
    """~ceil(B/2) rounded up to a multiple of 512, capped at block_b_max:
    keeps grid_b >= 2 (both v7x TensorCores fed) while tiles stay large enough
    to amortise the ~0.35us per-grid-step pipeline overhead."""
    half = -(-B // 2)
    half = ((half + 511) // 512) * 512
    return int(max(512, min(block_b_max, half)))


def reference_forward(x, p):
    """Pure-JAX (f32) reference of the PyTorch forward pass."""
    lrelu = lambda v: jnp.maximum(v, NEG_SLOPE * v)
    h = lrelu(x @ p["w1"].T + p["b1"][:, 0])
    h = lrelu(h @ p["w2"].T + p["b2"][:, 0])
    return lrelu(h @ p["w3"] + p["b3"][:, 0])


def combiner_forward(x, params, block_b_max=4096, min_pallas_batch=1024):
    """Dispatcher: tiny batches use plain XLA (launch overhead dominates and it
    keeps pure-f32 numerics); larger batches use the fused Pallas kernel."""
    if x.shape[0] < min_pallas_batch:
        return reference_forward(x, params)
    return _combiner_forward_pallas(x, params, _pick_block_b(x.shape[0], block_b_max))


def init_params(key, input_size):
    """Mirrors CombinerModel.__init__: weights ~ U(-0.1, 0.1); biases use
    PyTorch Linear's default U(-1/sqrt(fan_in), 1/sqrt(fan_in)).
    Stored in kernel layout: w1=(H1,D), w2=(H2,H1) (PyTorch (out,in) orient.),
    w3=(H2,1) column, biases as (out,1) columns."""
    h1 = input_size * 2
    h2 = round(input_size * 0.5)
    k = jax.random.split(key, 6)

    def wu(k_, shape):
        return jax.random.uniform(k_, shape, jnp.float32, -0.1, 0.1)

    def bu(k_, fan_in, out):
        bound = 1.0 / float(fan_in) ** 0.5
        return jax.random.uniform(k_, (out, 1), jnp.float32, -bound, bound)

    return {
        "w1": wu(k[0], (h1, input_size)),
        "b1": bu(k[1], input_size, h1),
        "w2": wu(k[2], (h2, h1)),
        "b2": bu(k[3], h1, h2),
        "w3": wu(k[4], (h2, 1)),
        "b3": bu(k[5], h2, 1),
    }


if __name__ == "__main__":
    input_size = 32
    batch = 1024          # -> block_b=512, grid of 2 steps (feeds both v7x TCs)

    key = jax.random.PRNGKey(0)
    kx, kp = jax.random.split(key)
    x = jax.random.normal(kx, (batch, input_size), jnp.float32)
    params = init_params(kp, input_size)

    y = combiner_forward(x, params)
    y = jax.block_until_ready(y)

    y_ref = reference_forward(x, params)
    assert y.shape == (batch, 1)
    # bf16 MXU operands (f32 accumulation) -> loosened tolerance vs f32 reference.
    # TODO(synk): verify bf16 operands are acceptable for production weight /
    # activation scales; drop the .astype(bfloat16) casts for exact f32 numerics.
    assert jnp.allclose(y, y_ref, atol=2e-2, rtol=2e-2), "mismatch vs reference"

    print("KERNEL_OK")
</pallas_src>

<mosaic_0001>
module attributes {stable_mosaic.version = 11 : i64} {
  func.func @combiner_kernel(%arg0: i32, %arg1: memref<512x32xf32, #tpu.memory_space<vmem>>, %arg2: memref<64x32xbf16, #tpu.memory_space<vmem>>, %arg3: memref<64x1xf32, #tpu.memory_space<vmem>>, %arg4: memref<16x64xbf16, #tpu.memory_space<vmem>>, %arg5: memref<16x1xf32, #tpu.memory_space<vmem>>, %arg6: memref<16x1xf32, #tpu.memory_space<vmem>>, %arg7: memref<1x1xf32, #tpu.memory_space<smem>>, %arg8: memref<1x512xf32, #tpu.memory_space<vmem>>) attributes {dimension_semantics = [#tpu.dimension_semantics<parallel>], iteration_bounds = array<i64: 2>, scalar_prefetch = 0 : i64, scratch_operands = 0 : i64, tpu.core_type = #tpu.core_type<tc>, window_params = [{transform_indices = @transform_0, window_bounds = array<i64: 512, 32>}, {pipeline_mode = #tpu.pipeline_mode<synchronous>, transform_indices = @transform_1, window_bounds = array<i64: 64, 32>}, {pipeline_mode = #tpu.pipeline_mode<synchronous>, transform_indices = @transform_2, window_bounds = array<i64: 64, 1>}, {pipeline_mode = #tpu.pipeline_mode<synchronous>, transform_indices = @transform_3, window_bounds = array<i64: 16, 64>}, {pipeline_mode = #tpu.pipeline_mode<synchronous>, transform_indices = @transform_4, window_bounds = array<i64: 16, 1>}, {pipeline_mode = #tpu.pipeline_mode<synchronous>, transform_indices = @transform_5, window_bounds = array<i64: 16, 1>}, {transform_indices = @transform_6, window_bounds = array<i64: 1, 1>}, {transform_indices = @transform_7, window_bounds = array<i64: 1, 512>}]} {
    %c0 = arith.constant 0 : index
    %c0_0 = arith.constant 0 : index
    %0 = vector.load %arg1[%c0, %c0_0] : memref<512x32xf32, #tpu.memory_space<vmem>>, vector<512x32xf32>
    %1 = arith.truncf %0 : vector<512x32xf32> to vector<512x32xbf16>
    %c0_1 = arith.constant 0 : index
    %c0_2 = arith.constant 0 : index
    %2 = vector.load %arg2[%c0_1, %c0_2] : memref<64x32xbf16, #tpu.memory_space<vmem>>, vector<64x32xbf16>
    %cst = arith.constant dense<0.000000e+00> : vector<64x512xf32>
    %3 = tpu.matmul %2, %1, %cst {dimension_numbers = #tpu.dot_dimension_numbers<[1], [1], [0], [0], [0, 0, 1, 0], [], []>} : vector<64x32xbf16>, vector<512x32xbf16>, vector<64x512xf32> -> vector<64x512xf32>
    %c0_3 = arith.constant 0 : index
    %c0_4 = arith.constant 0 : index
    %4 = vector.load %arg3[%c0_3, %c0_4] : memref<64x1xf32, #tpu.memory_space<vmem>>, vector<64x1xf32>
    %5 = vector.broadcast %4 : vector<64x1xf32> to vector<64x512xf32>
    %6 = arith.addf %3, %5 : vector<64x512xf32>
    %cst_5 = arith.constant 0.00999999977 : f32
    %7 = vector.broadcast %cst_5 : f32 to vector<64x512xf32>
    %8 = arith.mulf %7, %6 : vector<64x512xf32>
    %9 = arith.maximumf %6, %8 : vector<64x512xf32>
    %10 = arith.truncf %9 : vector<64x512xf32> to vector<64x512xbf16>
    %c0_6 = arith.constant 0 : index
    %c0_7 = arith.constant 0 : index
    %11 = vector.load %arg4[%c0_6, %c0_7] : memref<16x64xbf16, #tpu.memory_space<vmem>>, vector<16x64xbf16>
    %cst_8 = arith.constant dense<0.000000e+00> : vector<16x512xf32>
    %12 = tpu.matmul %11, %10, %cst_8 {dimension_numbers = #tpu.dot_dimension_numbers<[1], [0], [0], [1], [0, 0, 1, 1], [], []>} : vector<16x64xbf16>, vector<64x512xbf16>, vector<16x512xf32> -> vector<16x512xf32>
    %c0_9 = arith.constant 0 : index
    %c0_10 = arith.constant 0 : index
    %13 = vector.load %arg5[%c0_9, %c0_10] : memref<16x1xf32, #tpu.memory_space<vmem>>, vector<16x1xf32>
    %14 = vector.broadcast %13 : vector<16x1xf32> to vector<16x512xf32>
    %15 = arith.addf %12, %14 : vector<16x512xf32>
    %cst_11 = arith.constant 0.00999999977 : f32
    %16 = vector.broadcast %cst_11 : f32 to vector<16x512xf32>
    %17 = arith.mulf %16, %15 : vector<16x512xf32>
    %18 = arith.maximumf %15, %17 : vector<16x512xf32>
    %c0_12 = arith.constant 0 : index
    %c0_13 = arith.constant 0 : index
    %19 = vector.load %arg6[%c0_12, %c0_13] : memref<16x1xf32, #tpu.memory_space<vmem>>, vector<16x1xf32>
    %20 = vector.broadcast %19 : vector<16x1xf32> to vector<16x512xf32>
    %21 = arith.mulf %18, %20 : vector<16x512xf32>
    %cst_14 = arith.constant dense<0.000000e+00> : vector<512xf32>
    %22 = vector.multi_reduction <add>, %21, %cst_14 [0] : vector<16x512xf32> to vector<512xf32>
    %23 = vector.shape_cast %22 : vector<512xf32> to vector<1x512xf32>
    %c0_15 = arith.constant 0 : index
    %c0_16 = arith.constant 0 : index
    %24 = memref.load %arg7[%c0_15, %c0_16] : memref<1x1xf32, #tpu.memory_space<smem>>
    %25 = vector.broadcast %24 : f32 to vector<1x512xf32>
    %26 = arith.addf %23, %25 : vector<1x512xf32>
    %cst_17 = arith.constant 0.00999999977 : f32
    %27 = vector.broadcast %cst_17 : f32 to vector<1x512xf32>
    %28 = arith.mulf %27, %26 : vector<1x512xf32>
    %29 = arith.maximumf %26, %28 : vector<1x512xf32>
    %c0_18 = arith.constant 0 : index
    %c0_19 = arith.constant 0 : index
    %30 = vector.load %arg8[%c0_18, %c0_19] : memref<1x512xf32, #tpu.memory_space<vmem>>, vector<1x512xf32>
    tpu.vector_store %arg8[%c0_18, %c0_19], %29 {strides = array<i32>} : memref<1x512xf32, #tpu.memory_space<vmem>>, vector<1x512xf32>,
    return
  }
  func.func @transform_0(%arg0: i32) -> (i32, i32) {
    %c0_i32 = arith.constant 0 : i32
    %c0_i32_0 = arith.constant 0 : i32
    return %arg0, %c0_i32 : i32, i32
  }
  func.func @transform_1(%arg0: i32) -> (i32, i32) {
    %c0_i32 = arith.constant 0 : i32
    %c0_i32_0 = arith.constant 0 : i32
    %c0_i32_1 = arith.constant 0 : i32
    return %c0_i32, %c0_i32_0 : i32, i32
  }
  func.func @transform_2(%arg0: i32) -> (i32, i32) {
    %c0_i32 = arith.constant 0 : i32
    %c0_i32_0 = arith.constant 0 : i32
    %c0_i32_1 = arith.constant 0 : i32
    return %c0_i32, %c0_i32_0 : i32, i32
  }
  func.func @transform_3(%arg0: i32) -> (i32, i32) {
    %c0_i32 = arith.constant 0 : i32
    %c0_i32_0 = arith.constant 0 : i32
    %c0_i32_1 = arith.constant 0 : i32
    return %c0_i32, %c0_i32_0 : i32, i32
  }
  func.func @transform_4(%arg0: i32) -> (i32, i32) {
    %c0_i32 = arith.constant 0 : i32
    %c0_i32_0 = arith.constant 0 : i32
    %c0_i32_1 = arith.constant 0 : i32
    return %c0_i32, %c0_i32_0 : i32, i32
  }
  func.func @transform_5(%arg0: i32) -> (i32, i32) {
    %c0_i32 = arith.constant 0 : i32
    %c0_i32_0 = arith.constant 0 : i32
    %c0_i32_1 = arith.constant 0 : i32
    return %c0_i32, %c0_i32_0 : i32, i32
  }
  func.func @transform_6(%arg0: i32) -> (i32, i32) {
    %c0_i32 = arith.constant 0 : i32
    %c0_i32_0 = arith.constant 0 : i32
    %c0_i32_1 = arith.constant 0 : i32
    return %c0_i32, %c0_i32_0 : i32, i32
  }
  func.func @transform_7(%arg0: i32) -> (i32, i32) {
    %c0_i32 = arith.constant 0 : i32
    %c0_i32_0 = arith.constant 0 : i32
    return %c0_i32, %arg0 : i32, i32
  }
}

</mosaic_0001>

<bundles_post_ra>
// kernel: _combiner_forward_pallas.1
= control target key start
LH: loop header
LB: loop body
LE: loop exit
PB: predicated region body
PF: predicated region fallthrough
CT: control target
= control target key end

     0   :  { %s1608_s0 = inlined_call_operand.vmem [shape: f32[1024,32], index: 0, kind: input, shape index: {}]   ;;  %s1609_s1 = inlined_call_operand.vmem [shape: bf16[64,32], index: 1, kind: input, shape index: {}]   ;;  %s1610_s2 = inlined_call_operand.vmem [shape: f32[64,1], index: 2, kind: input, shape index: {}]   ;;  %s1611_s3 = inlined_call_operand.vmem [shape: bf16[16,64], index: 3, kind: input, shape index: {}]   ;;  %s1612_s4 = inlined_call_operand.vmem [shape: f32[16,1], index: 4, kind: input, shape index: {}]   ;;  %s1613_s5 = inlined_call_operand.vmem [shape: f32[16,1], index: 5, kind: input, shape index: {}]   ;;  %s1614_s6 = inlined_call_operand.<no memory space> [shape: f32[1,1], index: 6, kind: input, shape index: {}]   ;;  %s1615_s7 = inlined_call_operand.hbm [shape: f32[1,1024], index: 7, kind: output, shape index: {}]  }
   0x1   :  { %12 = sst [smem:[#allocation2]] %s1614_s6 }
   0x2   :  { %13 = vsyncpa [#allocation4], 0 }
   0x3   :  { %15 = vsyncpa [#allocation4 + $0x1], 0  ;;  %s1334_s26 = smov 0   ;;  %s1336_s27 = smov 0  }
   0x4   :  { %s1338_s28 = smov 0   ;;  %s1340_s29 = smov 0  }
   0x5 LB: > { %s1083_s6 = sadd.s32 4294967295, %s1286_s29   ;;  %s1084_s30 = sadd.s32 4294967294, %s1286_s29   ;;  %s1286_s29 = sphi %s1340_s29, %s1621_s29   ;;  %s1282_s28 = sphi %s1338_s28, %s1620_s28   ;;  %s1278_s27 = sphi %s1336_s27, %s1619_s27   ;;  %s1274_s26 = sphi %s1334_s26, %s1618_s26  }
   0x6   : > { %s1357_s8 = sadd.s32 1, %s1286_s29   ;;  %s180_s9 = sadd.s32 1, %s1282_s28 }
   0x7   : > { %s177_s10 = ssub.s32 %s1286_s29, %s1357_s8  ;;  %p190_p0 = scmp.ne.s32.totalorder %s1282_s28, %s1278_s27 }
   0x8   : > { %p178_p1 = scmp.eq.s32.totalorder %s177_s10, 0  ;;  %p191_p2 = scmp.eq.s32.totalorder %s1083_s6, 1 }
   0x9   : > { %p196_p3 = scmp.ne.s32.totalorder %s1278_s27, %s1274_s26  ;;  %p197_p4 = scmp.eq.s32.totalorder %s1084_s30, 1 }
   0xa   : > { %s1367_s11 = scalar_select %p178_p1, %s1282_s28, %s180_s9  }
   0xb   : > { %p1369_p5 = por %p191_p2, %p190_p0  ;;  %p1373_p6 = por %p197_p4, %p196_p3 }
   0xc   : > { %p1087_p7 = scmp.ge.s32.totalorder %s1286_s29, 1  ;;  %p242_p8 = scmp.lt.s32.totalorder %s1286_s29, 3 }
   0xe   : > { %p243_p9 = pnand %p1087_p7, %p242_p8 }
   0xf   : > { %s1379_s14 = sshll.u32 (!%p243_p9), %s1083_s6, 6  ;;  %v1385_v0 = vld [vmem:[%s1609_s1] sm:$0xff] (!%p243_p9)   ;;  %vm454_vm0 = vcmask (!%p243_p9), 261120   ;;  %v1288_v1 = vmov (!%p243_p9), 0   ;;  %v388_v3 = vld [vmem:[%s1610_s2 + $0x10] sm:$0xff] (!%p243_p9)  ;;  %v387_v4 = vld [vmem:[%s1610_s2 + $0x8] sm:$0xff] (!%p243_p9) }
  0x10   : > { %246 = sbr.rel (%p243_p9) target bundleno = 613 (0x265), region = 48  ;;  %p275_p10 = scmp.lt.s32.totalorder (!%p243_p9), %s1379_s14, 127  ;;  %1128 = vmatprep.mubr.msk.bf16.mxu0 (!%p243_p9), %vm454_vm0, %v1385_v0  ;;  %1152 = vmatprep.mubr.msk.bf16.mxu1 (!%p243_p9), %vm454_vm0, %v1385_v0  ;;  %v386_v2 = vld [vmem:[%s1610_s2] sm:$0xff] (!%p243_p9)  ;;  %v389_v5 = vld [vmem:[%s1610_s2 + $0x18] sm:$0xff] (!%p243_p9)  ;;  %v391_v31 = vld [vmem:[%s1610_s2 + $0x28] sm:$0xff] (!%p243_p9)  ;;  %vm808_vm1 = vcmask (!%p243_p9), 523264  }
  0x11   : > { %1217 = vset.pattern.permute.xlu0 (!%p243_p9), %v1288_v1  ;;  %1218 = vset.pattern.permute.xlu1 (!%p243_p9), %v1288_v1  ;;  %v390_v18 = vld [vmem:[%s1610_s2 + $0x20] sm:$0xff] (!%p243_p9)  ;;  %v392_v38 = vld [vmem:[%s1610_s2 + $0x30] sm:$0xff] (!%p243_p9)  ;;  %v393_v62 = vld [vmem:[%s1610_s2 + $0x38] sm:$0xff] (!%p243_p9)  ;;  %s962_s24 = sld [smem:[#allocation2]] (!%p243_p9)  ;;  %s271_s6 = sand.u32 (!%p243_p9), 1, %s1278_s27  }
  0x12   : > { %396 = vperm.xlu0 (!%p243_p9), %1217, %v386_v2   ;;  %406 = vperm.xlu1 (!%p243_p9), %1218, %v388_v3   ;;  %v791_v47 = vld [vmem:[%s1612_s4] sm:$0xff] (!%p243_p9)  ;;  %s1088_s30 = sshll.u32 (!%p243_p9), %s271_s6, 2  ;;  %s1011_s18 = scalar_lea.sflag (!%p243_p9), [#allocation4], %s271_s6 }
  0x13   : > { %v914_v63 = vld [vmem:[%s1613_s5] sm:$0xff] (!%p243_p9)  ;;  %s273_s9 = scalar_lea.vmem (!%p243_p9), [#allocation3], %s1088_s30  ;;  %s1290_s19 = smov (!%p243_p9), [#allocation3]  }
  0x14   : > { %s1025_s10 = sshll.u32 (!%p243_p9), %s273_s9, 4  ;;  %s1568_s10 = int_to_ptr.vmem [resolvable:$true] %s1025_s10 }
  0x16   : > { %401 = vperm.xlu0 (!%p243_p9), %1217, %v387_v4   ;;  %411 = vperm.xlu1 (!%p243_p9), %1218, %v389_v5  }
  0x17   : > { %s276_s17 = scalar_select %p275_p10, %s1379_s14, 127 }
  0x19   : > { %s1090_s20 = sshll.u32 %s276_s17, 3  ;;  %s1566_s17 = scalar_lea.hbm %s1615_s7, %s1379_s14 }
  0x1a   : > { %s1403_s25 = scalar_lea.vmem %s1608_s0, %s1090_s20  ;;  %416 = vperm.xlu0 %1217, %v390_v18   ;;  %421 = vperm.xlu1 %1218, %v391_v31   ;;  %s1228_s20 = sshll.u32 %s1290_s19, 4  ;;  %s1229_s20 = int_to_ptr.vmem [resolvable:$false] %s1228_s20 }
  0x1b   : > { %v298_v6 = vld [vmem:[%s1403_s25 + $0x80] sm:$0xff]  ;;  %v299_v7 = vld [vmem:[%s1403_s25 + $0x88] sm:$0xff]  ;;  %v300_v17 = vld [vmem:[%s1403_s25 + $0x90] sm:$0xff]  ;;  %s1230_s21 = scalar_lea.vmem %s1229_s20, 128  ;;  %p1231_p0 = scmp.lt.s32.totalorder %s1568_s10, %s1229_s20 }
  0x1c   : > { %v330_v8 = vld [vmem:[%s1403_s25 + $0x180] sm:$0xff]  ;;  %v354_v9 = vpack.c.bf16 %v299_v7, %v298_v6  ;;  %v331_v10 = vld [vmem:[%s1403_s25 + $0x188] sm:$0xff]  ;;  %v301_v20 = vld [vmem:[%s1403_s25 + $0x98] sm:$0xff] }
  0x1d   : > { %v282_v11 = vld [vmem:[%s1403_s25] sm:$0xff]  ;;  %v283_v12 = vld [vmem:[%s1403_s25 + $0x8] sm:$0xff]  ;;  %v370_v13 = vpack.c.bf16 %v331_v10, %v330_v8  ;;  %v332_v21 = vld [vmem:[%s1403_s25 + $0x190] sm:$0xff]  ;;  %v355_v24 = vpack.c.bf16 %v301_v20, %v300_v17 }
  0x1e   : > { %v346_v14 = vpack.c.bf16 %v283_v12, %v282_v11  ;;  %v314_v15 = vld [vmem:[%s1403_s25 + $0x100] sm:$0xff]  ;;  %v315_v16 = vld [vmem:[%s1403_s25 + $0x108] sm:$0xff]  ;;  %1160 = vmatprep.subr.msk.bf16.mxu0 %vm454_vm0, %v354_v9  ;;  %v333_v22 = vld [vmem:[%s1403_s25 + $0x198] sm:$0xff]  ;;  %426 = vperm.xlu0 %1217, %v392_v38  }
  0x1f   : > { %v362_v19 = vpack.c.bf16 %v315_v16, %v314_v15  ;;  %1168 = vmatprep.subr.msk.bf16.mxu1 %vm454_vm0, %v370_v13  ;;  %v371_v25 = vpack.c.bf16 %v333_v22, %v332_v21  ;;  %v284_v26 = vld [vmem:[%s1403_s25 + $0x10] sm:$0xff]  ;;  %v285_v27 = vld [vmem:[%s1403_s25 + $0x18] sm:$0xff]  ;;  %v302_v34 = vld [vmem:[%s1403_s25 + $0xa0] sm:$0xff]  ;;  %431 = vperm.xlu1 %1218, %v393_v62  }
  0x20   : > { %v468_v23 = vsel %vm454_vm0, %v346_v14, 0  ;;  %v316_v28 = vld [vmem:[%s1403_s25 + $0x110] sm:$0xff]  ;;  %v317_v30 = vld [vmem:[%s1403_s25 + $0x118] sm:$0xff]  ;;  %v347_v32 = vpack.c.bf16 %v285_v27, %v284_v26  ;;  %v303_v35 = vld [vmem:[%s1403_s25 + $0xa8] sm:$0xff] }
  0x21   : > { %1113 = vmatpush3.bf16.xpose.msra.mxu0 %v468_v23  ;;  %v516_v29 = vsel %vm454_vm0, %v362_v19, 0  ;;  %v363_v33 = vpack.c.bf16 %v317_v30, %v316_v28  ;;  %v334_v36 = vld [vmem:[%s1403_s25 + $0x1a0] sm:$0xff]  ;;  %v335_v37 = vld [vmem:[%s1403_s25 + $0x1a8] sm:$0xff]  ;;  %v356_v40 = vpack.c.bf16 %v303_v35, %v302_v34  ;;  %v304_v50 = vld [vmem:[%s1403_s25 + $0xb0] sm:$0xff] }
  0x22   : > { %1137 = vmatpush3.bf16.xpose.msra.mxu1 %v516_v29  ;;  %1161 = vmatprep.subr.msk.bf16.mxu0 %vm454_vm0, %v355_v24  ;;  %v471_v39 = vsel %vm454_vm0, %v347_v32, 0  ;;  %v372_v42 = vpack.c.bf16 %v335_v37, %v334_v36  ;;  %v286_v43 = vld [vmem:[%s1403_s25 + $0x20] sm:$0xff]  ;;  %v287_v44 = vld [vmem:[%s1403_s25 + $0x28] sm:$0xff]  ;;  %v305_v51 = vld [vmem:[%s1403_s25 + $0xb8] sm:$0xff] }
  0x23   : > { %1169 = vmatprep.subr.msk.bf16.mxu1 %vm454_vm0, %v371_v25  ;;  %v519_v41 = vsel %vm454_vm0, %v363_v33, 0  ;;  %v318_v45 = vld [vmem:[%s1403_s25 + $0x120] sm:$0xff]  ;;  %v319_v46 = vld [vmem:[%s1403_s25 + $0x128] sm:$0xff]  ;;  %v348_v48 = vpack.c.bf16 %v287_v44, %v286_v43  ;;  %795 = vperm.xlu0 %1217, %v791_v47   ;;  %v336_v52 = vld [vmem:[%s1403_s25 + $0x1b0] sm:$0xff]  ;;  %v357_v55 = vpack.c.bf16 %v305_v51, %v304_v50 }
  0x24   : > { %v364_v49 = vpack.c.bf16 %v319_v46, %v318_v45  ;;  %v337_v53 = vld [vmem:[%s1403_s25 + $0x1b8] sm:$0xff]  ;;  %v288_v58 = vld [vmem:[%s1403_s25 + $0x30] sm:$0xff]  ;;  %v306_v4 = vld [vmem:[%s1403_s25 + $0xc0] sm:$0xff] }
  0x25   : > { %v474_v54 = vsel %vm454_vm0, %v348_v48, 0  ;;  %v373_v57 = vpack.c.bf16 %v337_v53, %v336_v52  ;;  %v289_v59 = vld [vmem:[%s1403_s25 + $0x38] sm:$0xff]  ;;  %v320_v60 = vld [vmem:[%s1403_s25 + $0x130] sm:$0xff]  ;;  %v307_v5 = vld [vmem:[%s1403_s25 + $0xc8] sm:$0xff] }
  0x26   : > { %v522_v56 = vsel %vm454_vm0, %v364_v49, 0  ;;  %v321_v61 = vld [vmem:[%s1403_s25 + $0x138] sm:$0xff]  ;;  %v349_v2 = vpack.c.bf16 %v289_v59, %v288_v58  ;;  %v338_v6 = vld [vmem:[%s1403_s25 + $0x1c0] sm:$0xff]  ;;  %v339_v7 = vld [vmem:[%s1403_s25 + $0x1c8] sm:$0xff]  ;;  %v358_v10 = vpack.c.bf16 %v307_v5, %v306_v4 }
  0x27   : > { %v365_v3 = vpack.c.bf16 %v321_v61, %v320_v60  ;;  %918 = vperm.xlu0 %1217, %v914_v63   ;;  %v792_v8 = vld [vmem:[%s1612_s4 + $0x8] sm:$0xff]  ;;  %v374_v12 = vpack.c.bf16 %v339_v7, %v338_v6  ;;  %v290_v13 = vld [vmem:[%s1403_s25 + $0x40] sm:$0xff]  ;;  %v308_v20 = vld [vmem:[%s1403_s25 + $0xd0] sm:$0xff] }
  0x28   : > { %v477_v9 = vsel %vm454_vm0, %v349_v2, 0  ;;  %v291_v14 = vld [vmem:[%s1403_s25 + $0x48] sm:$0xff]  ;;  %800 = vperm.xlu1 %1218, %v792_v8   ;;  %v322_v15 = vld [vmem:[%s1403_s25 + $0x140] sm:$0xff]  ;;  %v309_v21 = vld [vmem:[%s1403_s25 + $0xd8] sm:$0xff] }
  0x29   : > { %1115 = vmatpush3.bf16.xpose.msra.mxu0 %v471_v39  ;;  %v525_v11 = vsel %vm454_vm0, %v365_v3, 0  ;;  %v323_v16 = vld [vmem:[%s1403_s25 + $0x148] sm:$0xff]  ;;  %v350_v18 = vpack.c.bf16 %v291_v14, %v290_v13  ;;  %v340_v22 = vld [vmem:[%s1403_s25 + $0x1d0] sm:$0xff]  ;;  %v341_v23 = vld [vmem:[%s1403_s25 + $0x1d8] sm:$0xff]  ;;  %v359_v25 = vpack.c.bf16 %v309_v21, %v308_v20 }
  0x2a   : > { %1139 = vmatpush3.bf16.xpose.msra.mxu1 %v519_v41  ;;  %1162 = vmatprep.subr.msk.bf16.mxu0 %vm454_vm0, %v356_v40  ;;  %v915_v17 = vld [vmem:[%s1613_s5 + $0x8] sm:$0xff]  ;;  %v366_v19 = vpack.c.bf16 %v323_v16, %v322_v15  ;;  %v375_v27 = vpack.c.bf16 %v341_v23, %v340_v22  ;;  %v292_v28 = vld [vmem:[%s1403_s25 + $0x50] sm:$0xff]  ;;  %v293_v29 = vld [vmem:[%s1403_s25 + $0x58] sm:$0xff] }
  0x2b   : > { %1170 = vmatprep.subr.msk.bf16.mxu1 %vm454_vm0, %v372_v42  ;;  %v480_v24 = vsel %vm454_vm0, %v350_v18, 0  ;;  %v324_v30 = vld [vmem:[%s1403_s25 + $0x150] sm:$0xff]  ;;  %v325_v31 = vld [vmem:[%s1403_s25 + $0x158] sm:$0xff]  ;;  %v351_v32 = vpack.c.bf16 %v293_v29, %v292_v28  ;;  %v310_v34 = vld [vmem:[%s1403_s25 + $0xe0] sm:$0xff] }
  0x2c   : > { %923 = vperm.xlu1 %1218, %v915_v17   ;;  %v528_v26 = vsel %vm454_vm0, %v366_v19, 0  ;;  %v367_v33 = vpack.c.bf16 %v325_v31, %v324_v30  ;;  %v311_v35 = vld [vmem:[%s1403_s25 + $0xe8] sm:$0xff]  ;;  %v342_v36 = vld [vmem:[%s1403_s25 + $0x1e0] sm:$0xff]  ;;  %v312_v48 = vld [vmem:[%s1403_s25 + $0xf0] sm:$0xff] }
  0x2d   : > { %v343_v37 = vld [vmem:[%s1403_s25 + $0x1e8] sm:$0xff]  ;;  %v483_v38 = vsel %vm454_vm0, %v351_v32, 0  ;;  %v360_v39 = vpack.c.bf16 %v311_v35, %v310_v34  ;;  %v294_v42 = vld [vmem:[%s1403_s25 + $0x60] sm:$0xff]  ;;  %v313_v49 = vld [vmem:[%s1403_s25 + $0xf8] sm:$0xff] }
  0x2e   : > { %v531_v40 = vsel %vm454_vm0, %v367_v33, 0  ;;  %v376_v41 = vpack.c.bf16 %v343_v37, %v342_v36  ;;  %v295_v43 = vld [vmem:[%s1403_s25 + $0x68] sm:$0xff]  ;;  %v326_v44 = vld [vmem:[%s1403_s25 + $0x160] sm:$0xff]  ;;  %v344_v50 = vld [vmem:[%s1403_s25 + $0x1f0] sm:$0xff]  ;;  %v361_v53 = vpack.c.bf16 %v313_v49, %v312_v48 }
  0x2f   : > { %v327_v45 = vld [vmem:[%s1403_s25 + $0x168] sm:$0xff]  ;;  %v352_v46 = vpack.c.bf16 %v295_v43, %v294_v42  ;;  %v345_v51 = vld [vmem:[%s1403_s25 + $0x1f8] sm:$0xff]  ;;  %v328_v58 = vld [vmem:[%s1403_s25 + $0x170] sm:$0xff] }
  0x30   : > { %v368_v47 = vpack.c.bf16 %v327_v45, %v326_v44  ;;  %v329_v59 = vld [vmem:[%s1403_s25 + $0x178] sm:$0xff]  ;;  %v1220_v2 = vld [vmem:[%s1609_s1 + $0x8] sm:$0xff]   ;;  %v1221_v3 = vld [vmem:[%s1609_s1 + $0x10] sm:$0xff]  }
  0x31   : > { %1117 = vmatpush3.bf16.xpose.msra.mxu0 %v474_v54  ;;  %v486_v52 = vsel %vm454_vm0, %v352_v46, 0  ;;  %v369_v61 = vpack.c.bf16 %v329_v59, %v328_v58 }
  0x32   : > { %1141 = vmatpush3.bf16.xpose.msra.mxu1 %v522_v56  ;;  %1163 = vmatprep.subr.msk.bf16.mxu0 %vm454_vm0, %v357_v55  ;;  %v534_v54 = vsel %vm454_vm0, %v368_v47, 0  ;;  %v377_v55 = vpack.c.bf16 %v345_v51, %v344_v50  ;;  %v296_v56 = vld [vmem:[%s1403_s25 + $0x70] sm:$0xff] }
  0x33   : > { %1171 = vmatprep.subr.msk.bf16.mxu1 %vm454_vm0, %v373_v57  ;;  %v297_v57 = vld [vmem:[%s1403_s25 + $0x78] sm:$0xff]  ;;  %v537_v63 = vsel %vm454_vm0, %v369_v61, 0  ;;  %s1224_s25 = scalar_lea.vmem %s1568_s10, 64 }
  0x34   : > { %v353_v60 = vpack.c.bf16 %v297_v57, %v296_v56  ;;  %p1225_p11 = scmp.ne.s32.totalorder %s1568_s10, %s1224_s25  ;;  %p1232_p1 = scmp.lt.s32.totalorder %s1230_s21, %s1224_s25 }
  0x36   : > { %v489_v62 = vsel %vm454_vm0, %v353_v60, 0  ;;  %p1226_p12 = pnand %p1225_p11, %p1369_p5  ;;  %p1233_p2 = por %p1232_p1, %p1231_p0 }
  0x38   : > { %p1227_p13 = pneg %p1226_p12 }
  0x39   : > { %1119 = vmatpush3.bf16.xpose.msra.mxu0 %v477_v9 }
  0x3a   : > { %1143 = vmatpush3.bf16.xpose.msra.mxu1 %v525_v11  ;;  %1164 = vmatprep.subr.msk.bf16.mxu0 %vm454_vm0, %v358_v10  ;;  %p1234_p3 = pnand %p1233_p2, %p1227_p13 }
  0x3b   : > { %1172 = vmatprep.subr.msk.bf16.mxu1 %vm454_vm0, %v374_v12 }
  0x41   : > { %1121 = vmatpush3.bf16.xpose.msra.mxu0 %v480_v24 }
  0x42   : > { %1145 = vmatpush3.bf16.xpose.msra.mxu1 %v528_v26  ;;  %1165 = vmatprep.subr.msk.bf16.mxu0 %vm454_vm0, %v359_v25 }
  0x43   : > { %1173 = vmatprep.subr.msk.bf16.mxu1 %vm454_vm0, %v375_v27 }
  0x49   : > { %1123 = vmatpush3.bf16.xpose.msra.mxu0 %v483_v38 }
  0x4a   : > { %1147 = vmatpush3.bf16.xpose.msra.mxu1 %v531_v40  ;;  %1166 = vmatprep.subr.msk.bf16.mxu0 %vm454_vm0, %v360_v39 }
  0x4b   : > { %1174 = vmatprep.subr.msk.bf16.mxu1 %vm454_vm0, %v376_v41 }
  0x51   : > { %1125 = vmatpush3.bf16.xpose.msra.mxu0 %v486_v52 }
  0x52   : > { %1149 = vmatpush3.bf16.xpose.msra.mxu1 %v534_v54  ;;  %1167 = vmatprep.subr.msk.bf16.mxu0 %vm454_vm0, %v361_v53 }
  0x53   : > { %1175 = vmatprep.subr.msk.bf16.mxu1 %vm454_vm0, %v377_v55 }
  0x59   : > { %1127 = vmatpush3.bf16.xpose.msra.mxu0 %v489_v62 }
  0x5a   : > { %1151 = vmatpush3.bf16.xpose.msra.mxu1 %v537_v63 }
  0x60   : > { %1129 = vmatmul.mubr.msk.bf16.vlgmr.msra.gmra.mrb[0].mxu0 %vm454_vm0, %v1385_v0 }
  0x61   : > { %1153 = vmatmul.mubr.msk.bf16.vlgmr.msra.gmra.mrb[0].mxu1 %vm454_vm0, %v1385_v0  ;;  %1130 = vmatprep.mubr.msk.bf16.mxu0 %vm454_vm0, %v1220_v2  ;;  %v1222_v0 = vld [vmem:[%s1609_s1 + $0x18] sm:$0xff]  }
  0x62   : > { %1154 = vmatprep.mubr.msk.bf16.mxu1 %vm454_vm0, %v1220_v2 }
  0x68   : > { %1131 = vmatmul.mubr.msk.bf16.gmra.mrb[4].mxu0 %vm454_vm0, %v1220_v2 }
  0x69   : > { %1155 = vmatmul.mubr.msk.bf16.gmra.mrb[4].mxu1 %vm454_vm0, %v1220_v2  ;;  %1132 = vmatprep.mubr.msk.bf16.mxu0 %vm454_vm0, %v1221_v3 }
  0x6a   : > { %1156 = vmatprep.mubr.msk.bf16.mxu1 %vm454_vm0, %v1221_v3 }
  0x70   : > { %1133 = vmatmul.mubr.msk.bf16.gmra.mrb[8].mxu0 %vm454_vm0, %v1221_v3 }
  0x71   : > { %1157 = vmatmul.mubr.msk.bf16.gmra.mrb[8].mxu1 %vm454_vm0, %v1221_v3  ;;  %1134 = vmatprep.mubr.msk.bf16.mxu0 %vm454_vm0, %v1222_v0 }
  0x72   : > { %1158 = vmatprep.mubr.msk.bf16.mxu1 %vm454_vm0, %v1222_v0 }
  0x78   : > { %1135 = vmatmul.mubr.msk.bf16.gmra.mrb[12].mxu0 %vm454_vm0, %v1222_v0 }
  0x79   : > { %1159 = vmatmul.mubr.msk.bf16.gmra.mrb[12].mxu1 %vm454_vm0, %v1222_v0  ;;  %844 = vmatprep.mubr.bf16.mxu0 %v1288_v1 }
  0x7a   : > { %887 = vmatprep.mubr.bf16.mxu1 %v1288_v1 }
  0x91   : > { %v397_v4 = vpop.permute.xlu0 %396  ;;  %v407_v5 = vpop.permute.xlu1 %406 }
  0x95   : > { %v402_v6 = vpop.permute.xlu0 %401  ;;  %v412_v32 = vpop.permute.xlu1 %411 }
  0x99   : > { %v417_v0 = vpop.permute.xlu0 %416 }
 0x133   : > { %v597_v7 = vpop.f32.mrb[0].mxu0 }
 0x134   : > { %v598_v8 = vadd.f32 %v597_v7, %v397_v4  ;;  %v670_v9 = vpop.f32.mrb[0].mxu1  ;;  %v599_v10 = vpop.f32.mrb[1].mxu0 }
 0x135   : > { %v671_v11 = vadd.f32 %v670_v9, %v397_v4  ;;  %v600_v12 = vadd.f32 %v599_v10, %v397_v4  ;;  %v672_v13 = vpop.f32.mrb[1].mxu1  ;;  %v601_v14 = vpop.f32.mrb[2].mxu0 }
 0x136   : > { %v709_v15 = vmul.f32 0.01, %v598_v8  ;;  %v673_v16 = vadd.f32 %v672_v13, %v397_v4  ;;  %v602_v17 = vadd.f32 %v601_v14, %v402_v6  ;;  %v674_v18 = vpop.f32.mrb[2].mxu1  ;;  %v603_v19 = vpop.f32.mrb[3].mxu0 }
 0x137   : > { %v711_v20 = vmul.f32 0.01, %v671_v11  ;;  %v710_v21 = vmul.f32 0.01, %v600_v12  ;;  %v675_v22 = vadd.f32 %v674_v18, %v402_v6  ;;  %v604_v1 = vadd.f32 %v603_v19, %v402_v6  ;;  %v676_v23 = vpop.f32.mrb[3].mxu1  ;;  %v422_v7 = vpop.permute.xlu1 %421 }
 0x138   : > { %v712_v24 = vmul.f32 0.01, %v673_v16  ;;  %v713_v25 = vmul.f32 0.01, %v602_v17  ;;  %v677_v26 = vadd.f32 %v676_v23, %v402_v6  ;;  %v741_v29 = vmax.f32 %v598_v8, %v709_v15 }
 0x139   : > { %v715_v27 = vmul.f32 0.01, %v675_v22  ;;  %v714_v28 = vmul.f32 0.01, %v604_v1  ;;  %v743_v33 = vmax.f32 %v671_v11, %v711_v20  ;;  %v742_v34 = vmax.f32 %v600_v12, %v710_v21 }
 0x13a   : > { %v745_v30 = vmax.f32 %v602_v17, %v713_v25  ;;  %v716_v31 = vmul.f32 0.01, %v677_v26  ;;  %v744_v38 = vmax.f32 %v673_v16, %v712_v24 }
 0x13b   : > { %v747_v35 = vmax.f32 %v675_v22, %v715_v27  ;;  %v746_v36 = vmax.f32 %v604_v1, %v714_v28  ;;  %v607_v37 = vpop.f32.mrb[4].mxu0 }
 0x13c   : > { %v773_v39 = vpack.c.bf16 %v745_v30, %v741_v29  ;;  %v748_v40 = vmax.f32 %v677_v26, %v716_v31  ;;  %v608_v41 = vadd.f32 %v607_v37, %v407_v5  ;;  %v680_v42 = vpop.f32.mrb[4].mxu1  ;;  %v609_v43 = vpop.f32.mrb[5].mxu0 }
 0x13d   : > { %v775_v44 = vpack.c.bf16 %v747_v35, %v743_v33  ;;  %v681_v45 = vadd.f32 %v680_v42, %v407_v5  ;;  %v610_v46 = vadd.f32 %v609_v43, %v407_v5  ;;  %v682_v47 = vpop.f32.mrb[5].mxu1  ;;  %v611_v48 = vpop.f32.mrb[6].mxu0  ;;  %v774_v49 = vpack.c.bf16 %v746_v36, %v742_v34 }
 0x13e   : > { %v717_v50 = vmul.f32 0.01, %v608_v41  ;;  %v683_v51 = vadd.f32 %v682_v47, %v407_v5  ;;  %v612_v52 = vadd.f32 %v611_v48, %v412_v32  ;;  %v684_v53 = vpop.f32.mrb[6].mxu1  ;;  %v613_v54 = vpop.f32.mrb[7].mxu0  ;;  %v776_v55 = vpack.c.bf16 %v748_v40, %v744_v38 }
 0x13f   : > { %v719_v56 = vmul.f32 0.01, %v681_v45  ;;  %v718_v57 = vmul.f32 0.01, %v610_v46  ;;  %v685_v58 = vadd.f32 %v684_v53, %v412_v32  ;;  %v614_v59 = vadd.f32 %v613_v54, %v412_v32  ;;  %v686_v60 = vpop.f32.mrb[7].mxu1  ;;  %812 = vmatprep.subr.bf16.mxu0 %v774_v49  ;;  %v427_v40 = vpop.permute.xlu0 %426 }
 0x140   : > { %v720_v61 = vmul.f32 0.01, %v683_v51  ;;  %v721_v62 = vmul.f32 0.01, %v612_v52  ;;  %v687_v63 = vadd.f32 %v686_v60, %v412_v32  ;;  %855 = vmatprep.subr.bf16.mxu1 %v776_v55  ;;  %813 = vmatpush1.bf16.msra.mxu0 %v773_v39  ;;  %v749_v4 = vmax.f32 %v608_v41, %v717_v50 }
 0x141   : > { %v723_v2 = vmul.f32 0.01, %v685_v58  ;;  %v722_v3 = vmul.f32 0.01, %v614_v59  ;;  %856 = vmatpush1.bf16.msra.mxu1 %v775_v44  ;;  %v751_v8 = vmax.f32 %v681_v45, %v719_v56  ;;  %v750_v9 = vmax.f32 %v610_v46, %v718_v57  ;;  %v432_v44 = vpop.permute.xlu1 %431 }
 0x142   : > { %v753_v5 = vmax.f32 %v612_v52, %v721_v62  ;;  %v724_v6 = vmul.f32 0.01, %v687_v63  ;;  %v752_v13 = vmax.f32 %v683_v51, %v720_v61 }
 0x143   : > { %v755_v10 = vmax.f32 %v685_v58, %v723_v2  ;;  %v754_v11 = vmax.f32 %v614_v59, %v722_v3  ;;  %v617_v12 = vpop.f32.mrb[8].mxu0 }
 0x144   : > { %v777_v14 = vpack.c.bf16 %v753_v5, %v749_v4  ;;  %v756_v15 = vmax.f32 %v687_v63, %v724_v6  ;;  %v618_v16 = vadd.f32 %v617_v12, %v417_v0  ;;  %v690_v17 = vpop.f32.mrb[8].mxu1  ;;  %v619_v18 = vpop.f32.mrb[9].mxu0 }
 0x145   : > { %v779_v19 = vpack.c.bf16 %v755_v10, %v751_v8  ;;  %v691_v20 = vadd.f32 %v690_v17, %v417_v0  ;;  %v620_v21 = vadd.f32 %v619_v18, %v417_v0  ;;  %v692_v22 = vpop.f32.mrb[9].mxu1  ;;  %v621_v1 = vpop.f32.mrb[10].mxu0  ;;  %v778_v23 = vpack.c.bf16 %v754_v11, %v750_v9 }
 0x146   : > { %v725_v24 = vmul.f32 0.01, %v618_v16  ;;  %v693_v25 = vadd.f32 %v692_v22, %v417_v0  ;;  %v622_v26 = vadd.f32 %v621_v1, %v422_v7  ;;  %v694_v27 = vpop.f32.mrb[10].mxu1  ;;  %v623_v28 = vpop.f32.mrb[11].mxu0  ;;  %v780_v29 = vpack.c.bf16 %v756_v15, %v752_v13 }
 0x147   : > { %v727_v30 = vmul.f32 0.01, %v691_v20  ;;  %v726_v31 = vmul.f32 0.01, %v620_v21  ;;  %v695_v32 = vadd.f32 %v694_v27, %v422_v7  ;;  %v624_v33 = vadd.f32 %v623_v28, %v422_v7  ;;  %v696_v34 = vpop.f32.mrb[11].mxu1  ;;  %814 = vmatprep.subr.bf16.mxu0 %v778_v23  ;;  %v1223_v27 = vld [vmem:[%s1611_s3] sm:$0xff]   ;;  %v796_v28 = vpop.permute.xlu0 %795 }
 0x148   : > { %v728_v35 = vmul.f32 0.01, %v693_v25  ;;  %v729_v36 = vmul.f32 0.01, %v622_v26  ;;  %v697_v37 = vadd.f32 %v696_v34, %v422_v7  ;;  %857 = vmatprep.subr.bf16.mxu1 %v780_v29  ;;  %815 = vmatpush1.bf16.msra.mxu0 %v777_v14  ;;  %v757_v41 = vmax.f32 %v618_v16, %v725_v24  ;;  %v801_v29 = vpop.permute.xlu1 %800 }
 0x149   : > { %v731_v38 = vmul.f32 0.01, %v695_v32  ;;  %v730_v39 = vmul.f32 0.01, %v624_v33  ;;  %858 = vmatpush1.bf16.msra.mxu1 %v779_v19  ;;  %v759_v45 = vmax.f32 %v691_v20, %v727_v30  ;;  %v758_v46 = vmax.f32 %v620_v21, %v726_v31 }
 0x14a   : > { %v761_v42 = vmax.f32 %v622_v26, %v729_v36  ;;  %v732_v43 = vmul.f32 0.01, %v697_v37  ;;  %v760_v50 = vmax.f32 %v693_v25, %v728_v35 }
 0x14b   : > { %v763_v47 = vmax.f32 %v695_v32, %v731_v38  ;;  %v762_v48 = vmax.f32 %v624_v33, %v730_v39  ;;  %v627_v49 = vpop.f32.mrb[12].mxu0 }
 0x14c   : > { %v781_v51 = vpack.c.bf16 %v761_v42, %v757_v41  ;;  %v764_v52 = vmax.f32 %v697_v37, %v732_v43  ;;  %v628_v53 = vadd.f32 %v627_v49, %v427_v40  ;;  %v700_v54 = vpop.f32.mrb[12].mxu1  ;;  %v629_v55 = vpop.f32.mrb[13].mxu0 }
 0x14d   : > { %v783_v56 = vpack.c.bf16 %v763_v47, %v759_v45  ;;  %v701_v57 = vadd.f32 %v700_v54, %v427_v40  ;;  %v630_v58 = vadd.f32 %v629_v55, %v427_v40  ;;  %v702_v59 = vpop.f32.mrb[13].mxu1  ;;  %v631_v60 = vpop.f32.mrb[14].mxu0  ;;  %v782_v61 = vpack.c.bf16 %v762_v48, %v758_v46 }
 0x14e   : > { %v733_v62 = vmul.f32 0.01, %v628_v53  ;;  %v703_v63 = vadd.f32 %v702_v59, %v427_v40  ;;  %v632_v2 = vadd.f32 %v631_v60, %v432_v44  ;;  %v704_v3 = vpop.f32.mrb[14].mxu1  ;;  %v633_v0 = vpop.f32.mrb[15].mxu0  ;;  %v784_v4 = vpack.c.bf16 %v764_v52, %v760_v50 }
 0x14f   : > { %v735_v5 = vmul.f32 0.01, %v701_v57  ;;  %v734_v6 = vmul.f32 0.01, %v630_v58  ;;  %v705_v7 = vadd.f32 %v704_v3, %v432_v44  ;;  %v634_v8 = vadd.f32 %v633_v0, %v432_v44  ;;  %v706_v9 = vpop.f32.mrb[15].mxu1  ;;  %816 = vmatprep.subr.bf16.mxu0 %v782_v61  ;;  %v919_v59 = vpop.permute.xlu0 %918 }
 0x150   : > { %v736_v10 = vmul.f32 0.01, %v703_v63  ;;  %v737_v11 = vmul.f32 0.01, %v632_v2  ;;  %v707_v12 = vadd.f32 %v706_v9, %v432_v44  ;;  %859 = vmatprep.subr.bf16.mxu1 %v784_v4  ;;  %817 = vmatpush1.bf16.msra.mxu0 %v781_v51  ;;  %v765_v15 = vmax.f32 %v628_v53, %v733_v62  ;;  %v924_v60 = vpop.permute.xlu1 %923 }
 0x151   : > { %v739_v13 = vmul.f32 0.01, %v705_v7  ;;  %v738_v14 = vmul.f32 0.01, %v634_v8  ;;  %860 = vmatpush1.bf16.msra.mxu1 %v783_v56  ;;  %v767_v18 = vmax.f32 %v701_v57, %v735_v5  ;;  %v766_v19 = vmax.f32 %v630_v58, %v734_v6 }
 0x152   : > { %v769_v16 = vmax.f32 %v632_v2, %v737_v11  ;;  %v740_v17 = vmul.f32 0.01, %v707_v12  ;;  %v768_v22 = vmax.f32 %v703_v63, %v736_v10 }
 0x153   : > { %v771_v20 = vmax.f32 %v705_v7, %v739_v13  ;;  %v770_v21 = vmax.f32 %v634_v8, %v738_v14 }
 0x154   : > { %v785_v1 = vpack.c.bf16 %v769_v16, %v765_v15  ;;  %v772_v23 = vmax.f32 %v707_v12, %v740_v17 }
 0x155   : > { %v787_v24 = vpack.c.bf16 %v771_v20, %v767_v18  ;;  %v786_v25 = vpack.c.bf16 %v770_v21, %v766_v19 }
 0x156   : > { %v788_v26 = vpack.c.bf16 %v772_v23, %v768_v22 }
 0x157   : > { %818 = vmatprep.subr.bf16.mxu0 %v786_v25 }
 0x158   : > { %861 = vmatprep.subr.bf16.mxu1 %v788_v26  ;;  %819 = vmatpush1.bf16.msra.mxu0 %v785_v1 }
 0x159   : > { %862 = vmatpush1.bf16.msra.mxu1 %v787_v24 }
 0x15b   : > { %1104 = vmatmul.mubr.msk.bf16.vlgmr.msra.gmra.mrb[16].mxu0 %vm808_vm1, %v1223_v27 }
 0x15c   : > { %1105 = vmatmul.mubr.msk.bf16.vlgmr.msra.gmra.mrb[16].mxu1 %vm808_vm1, %v1223_v27 }
 0x22e   : > { %v846_v30 = vpop.f32.mrb[16].mxu0 }
 0x22f   : > { %v847_v31 = vadd.f32 %v846_v30, %v796_v28  ;;  %v889_v32 = vpop.f32.mrb[16].mxu1  ;;  %v848_v33 = vpop.f32.mrb[17].mxu0 }
 0x230   : > { %v890_v34 = vadd.f32 %v889_v32, %v796_v28  ;;  %v849_v35 = vadd.f32 %v848_v33, %v796_v28  ;;  %v891_v36 = vpop.f32.mrb[17].mxu1  ;;  %v850_v37 = vpop.f32.mrb[18].mxu0  ;;  %v1289_v32 = vmov 1966171168  }
 0x231   : > { %v898_v38 = vmul.f32 0.01, %v847_v31  ;;  %v892_v39 = vadd.f32 %v891_v36, %v796_v28  ;;  %v851_v40 = vadd.f32 %v850_v37, %v801_v29  ;;  %v893_v41 = vpop.f32.mrb[18].mxu1  ;;  %v852_v42 = vpop.f32.mrb[19].mxu0  ;;  %v963_v28 = vstv %s962_s24 }
 0x232   : > { %v900_v43 = vmul.f32 0.01, %v890_v34  ;;  %v899_v44 = vmul.f32 0.01, %v849_v35  ;;  %v894_v45 = vadd.f32 %v893_v41, %v801_v29  ;;  %v853_v46 = vadd.f32 %v852_v42, %v801_v29  ;;  %v895_v47 = vpop.f32.mrb[19].mxu1 }
 0x233   : > { %v906_v48 = vmax.f32 %v847_v31, %v898_v38  ;;  %v901_v49 = vmul.f32 0.01, %v892_v39  ;;  %v902_v50 = vmul.f32 0.01, %v851_v40  ;;  %v896_v51 = vadd.f32 %v895_v47, %v801_v29 }
 0x234   : > { %v908_v52 = vmax.f32 %v890_v34, %v900_v43  ;;  %v907_v53 = vmax.f32 %v849_v35, %v899_v44  ;;  %v904_v54 = vmul.f32 0.01, %v894_v45  ;;  %v903_v55 = vmul.f32 0.01, %v853_v46 }
 0x235   : > { %v909_v56 = vmax.f32 %v892_v39, %v901_v49  ;;  %v910_v57 = vmax.f32 %v851_v40, %v902_v50  ;;  %v905_v58 = vmul.f32 0.01, %v896_v51  ;;  %v926_v63 = vmul.f32 %v919_v59, %v906_v48 }
 0x236   : > { %v912_v61 = vmax.f32 %v894_v45, %v904_v54  ;;  %v911_v62 = vmax.f32 %v853_v46, %v903_v55  ;;  %v928_v0 = vmul.f32 %v919_v59, %v908_v52  ;;  %v927_v4 = vmul.f32 %v919_v59, %v907_v53 }
 0x237   : > { %v930_v2 = vmul.f32 %v924_v60, %v910_v57  ;;  %v913_v3 = vmax.f32 %v896_v51, %v905_v58  ;;  %v929_v7 = vmul.f32 %v919_v59, %v909_v56  ;;  %v983_v33 = vunpack.c.l.s4 %v1289_v32 }
 0x238   : > { %v932_v5 = vmul.f32 %v924_v60, %v912_v61  ;;  %v931_v6 = vmul.f32 %v924_v60, %v911_v62  ;;  %v985_v34 = vlaneseq }
 0x239   : > { %v934_v8 = vadd.f32 %v930_v2, %v926_v63  ;;  %v933_v9 = vmul.f32 %v924_v60, %v913_v3  ;;  %v984_v43 = vunpack.c.0.s8 %v983_v33 }
 0x23a   : > { %v948_v10 = vadd.f32 %v932_v5, %v928_v0  ;;  %v941_v11 = vadd.f32 %v931_v6, %v927_v4  ;;  %v986_v44 = vshrl.u32 %v985_v34, 7  ;;  %vm1007_vm2 = vcmp.lt.s32.totalorder %v985_v34, 512 }
 0x23b   : > { %v935_v12 = vrot.slane %v934_v8, 4  ;;  %v955_v13 = vadd.f32 %v933_v9, %v929_v7 }
 0x23c   : > { %v949_v14 = vrot.slane %v948_v10, 4  ;;  %v942_v15 = vrot.slane %v941_v11, 4  ;;  %v987_v53 = vsub.s32 %v984_v43, %v986_v44 }
 0x23d   : > { %v936_v16 = vadd.f32 %v935_v12, %v934_v8  ;;  %v956_v17 = vrot.slane %v955_v13, 4 }
 0x23e   : > { %v950_v18 = vadd.f32 %v949_v14, %v948_v10  ;;  %v943_v19 = vadd.f32 %v942_v15, %v941_v11 }
 0x23f   : > { %v937_v20 = vrot.slane %v936_v16, 2  ;;  %v957_v21 = vadd.f32 %v956_v17, %v955_v13 }
 0x240   : > { %v951_v22 = vrot.slane %v950_v18, 2  ;;  %v944_v1 = vrot.slane %v943_v19, 2 }
 0x241   : > { %v938_v23 = vadd.f32 %v937_v20, %v936_v16  ;;  %v958_v24 = vrot.slane %v957_v21, 2 }
 0x242   : > { %v952_v25 = vadd.f32 %v951_v22, %v950_v18  ;;  %v945_v26 = vadd.f32 %v944_v1, %v943_v19 }
 0x243   : > { %v939_v27 = vrot.slane %v938_v23, 1  ;;  %v959_v29 = vadd.f32 %v958_v24, %v957_v21 }
 0x244   : > { %v953_v30 = vrot.slane %v952_v25, 1  ;;  %v946_v31 = vrot.slane %v945_v26, 1 }
 0x245   : > { %v940_v35 = vadd.f32 %v939_v27, %v938_v23  ;;  %v960_v36 = vrot.slane %v959_v29, 1 }
 0x246   : > { %v954_v37 = vadd.f32 %v953_v30, %v952_v25  ;;  %v947_v38 = vadd.f32 %v946_v31, %v945_v26 }
 0x247   : > { %v964_v39 = vadd.f32 %v963_v28, %v940_v35  ;;  %v961_v40 = vadd.f32 %v960_v36, %v959_v29 }
 0x248   : > { %v966_v41 = vadd.f32 %v963_v28, %v954_v37  ;;  %v965_v42 = vadd.f32 %v963_v28, %v947_v38 }
 0x249   : > { %v968_v45 = vmul.f32 0.01, %v964_v39  ;;  %v967_v46 = vadd.f32 %v963_v28, %v961_v40 }
 0x24a   : > { %v970_v47 = vmul.f32 0.01, %v966_v41  ;;  %v969_v48 = vmul.f32 0.01, %v965_v42 }
 0x24b   : > { %v971_v49 = vmul.f32 0.01, %v967_v46  ;;  %v972_v50 = vmax.f32 %v964_v39, %v968_v45 }
 0x24c   : > { %v973_v51 = vmax.f32 %v965_v42, %v969_v48  ;;  %v974_v52 = vmax.f32 %v966_v41, %v970_v47 }
 0x24d   : > { %v975_v54 = vmax.f32 %v967_v46, %v971_v49 }
 0x24e   : > { %v980_v55 = vcombine.low %v972_v50, %v973_v51 }
 0x24f   : > { %v981_v56 = vcombine.low %v974_v52, %v975_v54 }
 0x250   : > { %v988_v57 = vrot.slane %v980_v55, %v987_v53 }
 0x251   : > { %v995_v58 = vrot.slane %v981_v56, %v987_v53 }
 0x253   : > { %v996_v59 = vcombine.low %v988_v57, %v995_v58 }
 0x255   : > { %v1003_v60 = vrot.slane %v996_v59, %v987_v53 }
 0x257   : > { %1009 = vst.msk [vmem:[%s273_s9] sm:$0xf] %vm1007_vm2, %v1003_v60 }
 0x258   : > { %1237 = shalt.err (!%p1234_p3)
}
 0x259   : > { %s1238_s14 = scalar_lea.hbm %s1566_s17, 64  ;;  %s1242_s24 = scalar_lea.hbm %s1615_s7, 128 }
 0x25a   : > { %p1239_p4 = scmp.ne.s32.totalorder %s1566_s17, %s1238_s14  ;;  %p1243_p9 = scmp.lt.u32.totalorder %s1566_s17, %s1615_s7 }
 0x25b   : > { %p1244_p10 = scmp.lt.u32.totalorder %s1242_s24, %s1238_s14  ;;  %p1246_p12 = scmp.lt.u32.totalorder %s1238_s14, %s1566_s17 }
 0x25c   : > { %p1240_p7 = pnand %p1239_p4, %p1369_p5 }
 0x25d   : > { %p1245_p11 = por %p1244_p10, %p1243_p9 }
 0x25e   : > { %p1241_p8 = pneg %p1240_p7 }
 0x25f   : > { %p1247_p13 = por %p1246_p12, %p1245_p11 }
 0x261   : > { %p1248_p0 = pnand %p1247_p13, %p1241_p8 }
 0x263   : > { %1251 = shalt.err (!%p1248_p0)
}
 0x264   : > { %1176 = dma.vmem_to_hbm [thread:$0]  (%p1369_p5), %s1568_s10, 64, %s1566_s17, %s1011_s18  }
 0x265 PF: > { %p1182_p1 = scmp.ge.s32.totalorder %s1286_s29, 2  ;;  %s1037_s9 = sand.u32 1, %s1274_s26  }
 0x266   : > { %s1038_s15 = scalar_lea.sflag [#allocation4], %s1037_s9 }
 0x267   : > { %p1179_p2 = pnand %p1182_p1, %p1373_p6 }
 0x269   : > { %1269 = dma.done.wait (!%p1179_p2), %s1038_s15, 64  }
 0x26a   : > { %1271 = vsyncadd (!%p1179_p2), %s1038_s15, 4294967232  ;;  %p18_p3 = scmp.ge.s32.totalorder %s1357_s8, 4   ;;  %s1618_s26 = smov %s1278_s27 }
 0x26b   : > { %s1619_s27 = smov %s1282_s28  ;;  %s1620_s28 = smov %s1367_s11 }
 0x26c   : > { %s1621_s29 = smov %s1357_s8  ;;  %20 = sbr.rel (!%p18_p3) target bundleno = 5 (0x5), region = 83 }
 0x273   :  { %1043 = vsyncpa [#allocation4], 1 }
 0x274   :  { %1045 = vsyncpa [#allocation4 + $0x1], 1 }

</bundles_post_ra>
